<compile_context>
chip_gen: v6e
topology: v6e:2x2x1
jax: 0.10.0
libtpu: 0.0.40
codegen_flags: <defaults>
</compile_context>

<pallas_src>
import jax
import jax.numpy as jnp
from jax.experimental import pallas as pl
from jax.experimental.pallas import tpu as pltpu


def _datacontrol_kernel(x_ref, u_ref, o_ref):
    """One batch tile of out = concat([x, u.astype(out.dtype)], axis=1).

    x_ref : (tb, fx) VMEM tile of x        -- copied verbatim (same dtype).
    u_ref : (tb, fu) VMEM tile of u        -- cast + stored (mirrors `.to(x)`).
    o_ref : (tb, fx + fu) VMEM output tile.
    fx, fu are 128-multiples, so both stores are lane-aligned, unmasked vst's.
    """
    fx = x_ref.shape[1]
    o_ref[:, :fx] = x_ref[...]
    o_ref[:, fx:] = u_ref[...].astype(o_ref.dtype)


_SUBLANE_QUANTUM = {1: 32, 2: 16, 4: 8, 8: 8}


def _dtype_quantum(dt) -> int:
    """Sublane packing quantum for a dtype (bf16 vreg = 16x128, int8 = 32x128)."""
    return _SUBLANE_QUANTUM.get(jnp.dtype(dt).itemsize, 8)


def _vmem_budget_and_limit():
    """(working-set budget for tile picking, vmem_limit_bytes) per generation."""
    cap = 0
    try:
        cap = int(getattr(pltpu.get_tpu_info(), "vmem_capacity_bytes", 0) or 0)
    except Exception:
        cap = 0
    if cap >= 96 * 1024 * 1024:
        # v5e / v6e: 128 MiB physical VMEM -> big tiles, fewer grid steps.
        return 24 * 1024 * 1024, 64 * 1024 * 1024
    # v7x (64 MiB physical / 32 MiB scoped default) or unknown: stay safe.
    return 12 * 1024 * 1024, 32 * 1024 * 1024


def _pick_batch_tile(b, fx, fu, x_isz, u_isz, quantum, budget_bytes):
    """Largest quantum-multiple batch tile whose double-buffered working set
    (x tile + u tile + out tile, each x2 for pipelining) fits the budget,
    capped at (rounded-up) b, and halved until >= 2 grid steps exist so the
    parallel batch axis can split across two TensorCores."""
    out_isz = x_isz
    bytes_per_row = 2 * (fx * x_isz + fu * u_isz + (fx + fu) * out_isz)
    max_rows = max(quantum, budget_bytes // bytes_per_row)
    tb = max(quantum, (max_rows // quantum) * quantum)

    b_rounded = ((b + quantum - 1) // quantum) * quantum
    tb = min(tb, b_rounded)

    # Guarantee at least 2 grid steps (megacore / v7x 2-TC split) when possible.
    while pl.cdiv(b, tb) < 2 and tb > quantum:
        tb = max(quantum, ((tb // 2) // quantum) * quantum)
    return tb


def data_control_forward(x: jax.Array, u: jax.Array) -> jax.Array:
    """Pallas equivalent of DataControl.forward: cat([x, u], axis=1).to(x.dtype)."""
    assert x.ndim == u.ndim, "x and u must have the same rank"
    assert x.shape[0] == u.shape[0], "batch dims must match"

    # Rank != 2: no channel-tiled kernel variant -- plain XLA concat.
    if x.ndim != 2:
        return jnp.concatenate([x, u.astype(x.dtype)], axis=1)

    b, fx = x.shape
    _, fu = u.shape
    x_isz = jnp.dtype(x.dtype).itemsize
    u_isz = jnp.dtype(u.dtype).itemsize
    out_bytes = b * (fx + fu) * x_isz

    # Fallback gates: unaligned feature widths (would force masked stores),
    # tiny totals (launch overhead dominates), or no cast needed (pure copy --
    # XLA's fused concat is already optimal).
    if (
        (fx % 128 != 0)
        or (fu % 128 != 0)
        or (out_bytes < 512 * 1024)
        or (jnp.dtype(u.dtype) == jnp.dtype(x.dtype))
    ):
        return jnp.concatenate([x, u.astype(x.dtype)], axis=1)

    quantum = max(_dtype_quantum(x.dtype), _dtype_quantum(u.dtype))
    budget, vmem_limit = _vmem_budget_and_limit()
    tb = _pick_batch_tile(b, fx, fu, x_isz, u_isz, quantum, budget)

    grid = (pl.cdiv(b, tb),)
    out_shape = jax.ShapeDtypeStruct((b, fx + fu), x.dtype)

    grid_spec = pltpu.PrefetchScalarGridSpec(
        num_scalar_prefetch=0,
        grid=grid,
        in_specs=[
            pl.BlockSpec((tb, fx), lambda i: (i, 0)),
            pl.BlockSpec((tb, fu), lambda i: (i, 0)),
        ],
        out_specs=pl.BlockSpec((tb, fx + fu), lambda i: (i, 0)),
    )

    # Honest 0-FLOP, bytes-only estimate: read x + read u + write out.
    cost = pl.CostEstimate(
        flops=0,
        transcendentals=0,
        bytes_accessed=b * fx * x_isz + b * fu * u_isz + out_bytes,
    )

    return pl.pallas_call(
        _datacontrol_kernel,
        out_shape=out_shape,
        grid_spec=grid_spec,
        compiler_params=pltpu.CompilerParams(
            # Batch axis is embarrassingly parallel -> megacore / v7x 2-TC split.
            dimension_semantics=("parallel",),
            vmem_limit_bytes=vmem_limit,
        ),
        cost_estimate=cost,
    )(x, u)


class DataControl:
    """Data-control module: stashes `u` and concatenates it to x on forward."""

    def __init__(self):
        self.u = None

    def __call__(self, x):
        return data_control_forward(x, self.u)


if __name__ == "__main__":
    key = jax.random.PRNGKey(0)
    kx, ku = jax.random.split(key)

    # Shapes just big enough (> 512 KiB out) and 128-aligned so the Pallas
    # path is exercised; u is bf16 to exercise the `.to(x)` cast.
    batch, fx, fu = 256, 512, 256
    x = jax.random.normal(kx, (batch, fx), dtype=jnp.float32)
    u = jax.random.normal(ku, (batch, fu), dtype=jnp.bfloat16)

    module = DataControl()
    module.u = u  # torchdyn's DEFunc sets this before calling forward

    out = jax.block_until_ready(module(x))

    ref = jnp.concatenate([x, u.astype(x.dtype)], axis=1)
    assert out.shape == (batch, fx + fu), out.shape
    assert out.dtype == x.dtype, out.dtype
    assert jnp.allclose(out, ref), "mismatch vs reference concat"

    # Tiny, unaligned shapes (the original torchdyn-style demo) take the
    # jnp.concatenate fallback path.
    x_small = jax.random.normal(kx, (2, 32), dtype=jnp.float32)
    u_small = jax.random.normal(ku, (2, 32), dtype=jnp.bfloat16)
    m_small = DataControl()
    m_small.u = u_small
    out_small = jax.block_until_ready(m_small(x_small))
    ref_small = jnp.concatenate([x_small, u_small.astype(x_small.dtype)], axis=1)
    assert out_small.shape == (2, 64)
    assert out_small.dtype == x_small.dtype
    assert jnp.allclose(out_small, ref_small)

    print("KERNEL_OK")
</pallas_src>

<mosaic_0001>
module attributes {stable_mosaic.version = 11 : i64} {
  func.func @_datacontrol_kernel(%arg0: i32, %arg1: memref<128x512xf32, #tpu.memory_space<vmem>>, %arg2: memref<128x256xbf16, #tpu.memory_space<vmem>>, %arg3: memref<128x768xf32, #tpu.memory_space<vmem>>) attributes {dimension_semantics = [#tpu.dimension_semantics<parallel>], iteration_bounds = array<i64: 2>, scalar_prefetch = 0 : i64, scratch_operands = 0 : i64, tpu.core_type = #tpu.core_type<tc>, window_params = [{transform_indices = @transform_0, window_bounds = array<i64: 128, 512>}, {transform_indices = @transform_1, window_bounds = array<i64: 128, 256>}, {transform_indices = @transform_2, window_bounds = array<i64: 128, 768>}]} {
    %c0 = arith.constant 0 : index
    %c0_0 = arith.constant 0 : index
    %0 = vector.load %arg1[%c0, %c0_0] : memref<128x512xf32, #tpu.memory_space<vmem>>, vector<128x512xf32>
    %c0_1 = arith.constant 0 : index
    %c0_2 = arith.constant 0 : index
    %1 = vector.load %arg3[%c0_1, %c0_2] : memref<128x768xf32, #tpu.memory_space<vmem>>, vector<128x512xf32>
    tpu.vector_store %arg3[%c0_1, %c0_2], %0 {strides = array<i32>} : memref<128x768xf32, #tpu.memory_space<vmem>>, vector<128x512xf32>,
    %c0_3 = arith.constant 0 : index
    %c0_4 = arith.constant 0 : index
    %2 = vector.load %arg2[%c0_3, %c0_4] : memref<128x256xbf16, #tpu.memory_space<vmem>>, vector<128x256xbf16>
    %3 = arith.extf %2 : vector<128x256xbf16> to vector<128x256xf32>
    %c0_5 = arith.constant 0 : index
    %c512 = arith.constant 512 : index
    %4 = vector.load %arg3[%c0_5, %c512] : memref<128x768xf32, #tpu.memory_space<vmem>>, vector<128x256xf32>
    tpu.vector_store %arg3[%c0_5, %c512], %3 {strides = array<i32>} : memref<128x768xf32, #tpu.memory_space<vmem>>, vector<128x256xf32>,
    return
  }
  func.func @transform_0(%arg0: i32) -> (i32, i32) {
    %c0_i32 = arith.constant 0 : i32
    %c0_i32_0 = arith.constant 0 : i32
    return %arg0, %c0_i32 : i32, i32
  }
  func.func @transform_1(%arg0: i32) -> (i32, i32) {
    %c0_i32 = arith.constant 0 : i32
    %c0_i32_0 = arith.constant 0 : i32
    return %arg0, %c0_i32 : i32, i32
  }
  func.func @transform_2(%arg0: i32) -> (i32, i32) {
    %c0_i32 = arith.constant 0 : i32
    %c0_i32_0 = arith.constant 0 : i32
    return %arg0, %c0_i32 : i32, i32
  }
}

</mosaic_0001>

<bundles_post_ra>
// kernel: tpu_custom_call.1
= control target key start
LH: loop header
LB: loop body
LE: loop exit
PB: predicated region body
PF: predicated region fallthrough
CT: control target
= control target key end

     0   :  { %7 = vsyncpa [#allocation3], 0  ;;  %s1153_s0 = inlined_call_operand.hbm [shape: f32[256,512], index: 0, kind: input, shape index: {}]   ;;  %s1154_s1 = inlined_call_operand.hbm [shape: bf16[256,256], index: 1, kind: input, shape index: {}]   ;;  %s1155_s2 = inlined_call_operand.hbm [shape: f32[256,768], index: 2, kind: output, shape index: {}]  }
   0x1   :  { %9 = vsyncpa [#allocation3 + $0x1], 0 }
   0x2   :  { %10 = vsyncpa [#allocation6], 0 }
   0x3   :  { %12 = vsyncpa [#allocation6 + $0x1], 0 }
   0x4   :  { %13 = vsyncpa [#allocation4], 0 }
   0x5   :  { %15 = vsyncpa [#allocation4 + $0x1], 0  ;;  %s758_s9 = smov 0   ;;  %s760_s10 = smov 0  }
   0x6   :  { %s762_s11 = smov 0   ;;  %s764_s12 = smov 0  }
   0x7 LB: > { %s779_s13 = sadd.s32 4294967295, %s732_s12   ;;  %s526_s14 = sadd.s32 4294967294, %s732_s12   ;;  %s732_s12 = sphi %s764_s12, %s1171_s12   ;;  %s728_s11 = sphi %s762_s11, %s1170_s11   ;;  %s724_s10 = sphi %s760_s10, %s1169_s10   ;;  %s720_s9 = sphi %s758_s9, %s1168_s9  }
   0x8   : > { %s783_s15 = sadd.s32 1, %s732_s12   ;;  %s28_s16 = sadd.s32 1, %s728_s11 }
   0x9   : > { %s25_s17 = ssub.s32 %s732_s12, %s783_s15  ;;  %p35_p0 = scmp.ne.s32.totalorder %s728_s11, %s724_s10 }
   0xa   : > { %p26_p1 = scmp.eq.s32.totalorder %s25_s17, 0  ;;  %p36_p2 = scmp.eq.s32.totalorder %s732_s12, 0 }
   0xb   : > { %p41_p3 = scmp.ne.s32.totalorder %s724_s10, %s720_s9  ;;  %p42_p4 = scmp.eq.s32.totalorder %s779_s13, 0 }
   0xc   : > { %s795_s18 = scalar_select %p26_p1, %s728_s11, %s28_s16  }
   0xd   : > { %p797_p5 = por %p36_p2, %p35_p0  ;;  %p801_p6 = por %p42_p4, %p41_p3 }
   0xe   : > { %p91_p7 = scmp.eq.s32.totalorder %s779_s13, 1  ;;  %p97_p8 = scmp.eq.s32.totalorder %s526_s14, 1 }
   0xf   : > { %s1159_s20 = scalar_select %p801_p6, 1, 0 }
  0x10   : > { %p568_p10 = scmp.lt.s32.totalorder %s732_s12, 2  ;;  %p808_p11 = por %p91_p7, %p35_p0 }
  0x11   : > { %p812_p12 = por %p97_p8, %p41_p3  ;;  %s817_s23 = sand.u32 1, %s728_s11  }
  0x12   : > { %s1160_s21 = scalar_select %p808_p11, 1, 0 }
  0x13   : > { %s1161_s22 = scalar_select %p812_p12, 1, 0 }
  0x14   : > { %s546_s24 = sshll.u32 %s732_s12, 13  ;;  %s529_s25 = sshll.u32 %s817_s23, 9 }
  0x15   : > { %s824_s28 = scalar_lea.hbm %s1153_s0, %s546_s24  ;;  %s121_s29 = scalar_lea.vmem [#allocation2], %s529_s25 }
  0x16   : > { %s129_s30 = sshll.u32 %s121_s29, 4  ;;  %p828_p13 = pnand %p568_p10, %p797_p5  ;;  %s832_s30 = int_to_ptr.vmem [resolvable:$true] %s129_s30 }
  0x17   : > { %s118_s4 = scalar_lea.sflag [#allocation3], %s817_s23  ;;  %s608_s5 = scalar_lea.hbm %s824_s28, 8192 }
  0x18   : > { %p609_p0 = scmp.ne.s32.totalorder %s824_s28, %s608_s5  ;;  %p610_p1 = pneg %p828_p13 }
  0x19   : > { %s613_s8 = scalar_lea.hbm %s1153_s0, 16384  ;;  %p614_p4 = scmp.lt.s32.totalorder %s824_s28, %s1153_s0 }
  0x1a   : > { %p611_p2 = pnand %p610_p1, %p609_p0  ;;  %p615_p5 = scmp.lt.s32.totalorder %s613_s8, %s608_s5 }
  0x1c   : > { %p612_p3 = pneg %p611_p2  ;;  %p616_p7 = por %p615_p5, %p614_p4 }
  0x1e   : > { %p617_p8 = pnand %p616_p7, %p612_p3 }
  0x20   : > { %620 = shalt.err (!%p617_p8)
}
  0x21   : > { %s621_s17 = scalar_lea.vmem %s832_s30, 8192  ;;  %s734_s19 = smov [#allocation2]  }
  0x22   : > { %p622_p10 = scmp.ne.s32.totalorder %s832_s30, %s621_s17  ;;  %s626_s24 = sshll.u32 %s734_s19, 4  ;;  %s627_s24 = int_to_ptr.vmem [resolvable:$false] %s626_s24 }
  0x23   : > { %s628_s25 = scalar_lea.vmem %s627_s24, 16384  ;;  %p629_p9 = scmp.lt.s32.totalorder %s832_s30, %s627_s24 }
  0x24   : > { %p624_p0 = pnand %p622_p10, %p610_p1  ;;  %p630_p12 = scmp.lt.s32.totalorder %s628_s25, %s621_s17 }
  0x26   : > { %p625_p2 = pneg %p624_p0  ;;  %p631_p11 = por %p630_p12, %p629_p9 }
  0x28   : > { %p632_p4 = pnand %p631_p11, %p625_p2 }
  0x2a   : > { %635 = shalt.err (!%p632_p4)
}
  0x2b   : > { %s735_s26 = smov 512   ;;  %s736_s27 = smov 32  }
  0x2c   : > { %560 = dma.hbm_to_vmem [thread:$0]  (!%p828_p13), %s824_s28, 8192, %s832_s30, %s118_s4, %s735_s26, %s735_s26, %s736_s27  }
  0x2d   : > { %p537_p3 = scmp.ge.s32.totalorder %s732_s12, 1  ;;  %p159_p5 = scmp.lt.s32.totalorder %s732_s12, 3 }
  0x2e   : > { %s533_s29 = sshll.u32 %s817_s23, 7  ;;  %s548_s6 = sshll.u32 %s732_s12, 11 }
  0x2f   : > { %p864_p9 = pnand %p537_p3, %p159_p5  ;;  %s143_s7 = scalar_lea.vmem [#allocation5], %s533_s29 }
  0x30   : > { %s151_s8 = sshll.u32 %s143_s7, 4  ;;  %s872_s17 = scalar_lea.hbm %s1154_s1, %s548_s6  ;;  %s874_s8 = int_to_ptr.vmem [resolvable:$true] %s151_s8 }
  0x31   : > { %s140_s28 = scalar_lea.sflag [#allocation6], %s817_s23  ;;  %s636_s30 = scalar_lea.hbm %s872_s17, 2048 }
  0x32   : > { %p637_p11 = scmp.ne.s32.totalorder %s872_s17, %s636_s30  ;;  %s641_s24 = scalar_lea.hbm %s1154_s1, 4096 }
  0x33   : > { %p642_p8 = scmp.lt.s32.totalorder %s872_s17, %s1154_s1  ;;  %p643_p10 = scmp.lt.s32.totalorder %s641_s24, %s636_s30 }
  0x34   : > { %p639_p12 = pnand %p637_p11, %p610_p1 }
  0x35   : > { %p644_p0 = por %p643_p10, %p642_p8 }
  0x36   : > { %p640_p7 = pneg %p639_p12 }
  0x38   : > { %p645_p2 = pnand %p644_p0, %p640_p7 }
  0x3a   : > { %648 = shalt.err (!%p645_p2)
}
  0x3b   : > { %s649_s27 = scalar_lea.vmem %s874_s8, 2048  ;;  %s737_s29 = smov [#allocation5]  }
  0x3c   : > { %p650_p4 = scmp.ne.s32.totalorder %s874_s8, %s649_s27  ;;  %s654_s6 = sshll.u32 %s737_s29, 4  ;;  %s655_s6 = int_to_ptr.vmem [resolvable:$false] %s654_s6 }
  0x3d   : > { %s656_s7 = scalar_lea.vmem %s655_s6, 4096  ;;  %p657_p11 = scmp.lt.s32.totalorder %s874_s8, %s655_s6 }
  0x3e   : > { %p652_p3 = pnand %p650_p4, %p610_p1  ;;  %p658_p12 = scmp.lt.s32.totalorder %s656_s7, %s649_s27 }
  0x40   : > { %p653_p5 = pneg %p652_p3  ;;  %p659_p6 = por %p658_p12, %p657_p11 }
  0x42   : > { %p660_p8 = pnand %p659_p6, %p653_p5 }
  0x44   : > { %663 = shalt.err (!%p660_p8)
}
  0x45   : > { %s738_s14 = smov 128   ;;  %s739_s16 = smov 8  }
  0x46   : > { %563 = dma.hbm_to_vmem [thread:$0]  (!%p828_p13), %s872_s17, 2048, %s874_s8, %s140_s28, %s738_s14, %s738_s14, %s739_s16  }
  0x47   : > { %163 = sbr.rel (%p864_p9) target bundleno = 144 (0x90), region = 28  ;;  %s904_s30 = sand.u32 (!%p864_p9), 1, %s724_s10  }
  0x48   : > { %s538_s4 = sshll.u32 (!%p864_p9), %s904_s30, 9  ;;  %s166_s19 = scalar_lea.sflag (!%p864_p9), [#allocation3], %s904_s30 }
  0x49   : > { %s908_s24 = scalar_lea.vmem (!%p864_p9), [#allocation2], %s538_s4  ;;  %p1164_p6 = scmp.ne.s32.totalorder (!%p864_p9), %s1159_s20, 0 }
  0x4c   : > { %707 = dma.done.wait (%p1164_p6), %s166_s19, 8192  }
  0x4d   : > { %709 = vsyncadd (%p1164_p6), %s166_s19, 4294959104  ;;  %s539_s23 = sshll.u32 %s904_s30, 7  ;;  %s175_s3 = scalar_lea.sflag [#allocation6], %s904_s30 }
  0x4e   : > { %s916_s5 = scalar_lea.vmem [#allocation5], %s539_s23 }
  0x4f   : > { %711 = dma.done.wait (%p1164_p6), %s175_s3, 2048  }
  0x50   : > { %713 = vsyncadd (%p1164_p6), %s175_s3, 4294965248  ;;  %s549_s8 = smul.u32 768, %s904_s30  ;;  %v207_v0 = vld [vmem:[%s908_s24] sm:$0xff]  ;;  %v208_v1 = vld [vmem:[%s908_s24 + $0x8] sm:$0xff]  ;;  %s416_s29 = scalar_lea.sflag [#allocation4], %s904_s30 }
  0x51   : > { %v209_v2 = vld [vmem:[%s908_s24 + $0x10] sm:$0xff]  ;;  %v210_v3 = vld [vmem:[%s908_s24 + $0x18] sm:$0xff]  ;;  %v211_v4 = vld [vmem:[%s908_s24 + $0x20] sm:$0xff]  ;;  %s550_s20 = smul.u32 12288, %s779_s13  ;;  %p1165_p1 = scmp.ne.s32.totalorder %s1160_s21, 0 }
  0x52   : > { %s926_s17 = scalar_lea.vmem [#allocation7], %s549_s8  ;;  %v212_v5 = vld [vmem:[%s908_s24 + $0x28] sm:$0xff]  ;;  %v213_v6 = vld [vmem:[%s908_s24 + $0x30] sm:$0xff]  ;;  %v214_v7 = vld [vmem:[%s908_s24 + $0x38] sm:$0xff]  ;;  %s740_s6 = smov [#allocation7]  }
  0x53   : > { %271 = vst [vmem:[%s926_s17] sm:$0xff] %v207_v0  ;;  %272 = vst [vmem:[%s926_s17 + $0x8] sm:$0xff] %v208_v1  ;;  %v215_v8 = vld [vmem:[%s908_s24 + $0x40] sm:$0xff]  ;;  %v216_v9 = vld [vmem:[%s908_s24 + $0x48] sm:$0xff]  ;;  %s430_s28 = sshll.u32 %s926_s17, 4  ;;  %s1100_s27 = scalar_lea.hbm %s1155_s2, %s550_s20  ;;  %s1102_s28 = int_to_ptr.vmem [resolvable:$true] %s430_s28 }
  0x54   : > { %273 = vst [vmem:[%s926_s17 + $0x10] sm:$0xff] %v209_v2  ;;  %274 = vst [vmem:[%s926_s17 + $0x18] sm:$0xff] %v210_v3  ;;  %v217_v10 = vld [vmem:[%s908_s24 + $0x50] sm:$0xff]  ;;  %v218_v11 = vld [vmem:[%s908_s24 + $0x58] sm:$0xff]  ;;  %s664_s13 = scalar_lea.vmem %s1102_s28, 12288  ;;  %s668_s7 = sshll.u32 %s740_s6, 4  ;;  %s669_s7 = int_to_ptr.vmem [resolvable:$false] %s668_s7 }
  0x55   : > { %275 = vst [vmem:[%s926_s17 + $0x30] sm:$0xff] %v211_v4  ;;  %276 = vst [vmem:[%s926_s17 + $0x38] sm:$0xff] %v212_v5  ;;  %v219_v12 = vld [vmem:[%s908_s24 + $0x60] sm:$0xff]  ;;  %v220_v13 = vld [vmem:[%s908_s24 + $0x68] sm:$0xff]  ;;  %p665_p13 = scmp.ne.s32.totalorder %s1102_s28, %s664_s13  ;;  %s670_s14 = scalar_lea.vmem %s669_s7, 24576 }
  0x56   : > { %277 = vst [vmem:[%s926_s17 + $0x40] sm:$0xff] %v213_v6  ;;  %278 = vst [vmem:[%s926_s17 + $0x48] sm:$0xff] %v214_v7  ;;  %v221_v14 = vld [vmem:[%s908_s24 + $0x70] sm:$0xff]  ;;  %v222_v15 = vld [vmem:[%s908_s24 + $0x78] sm:$0xff]  ;;  %p671_p10 = scmp.lt.s32.totalorder %s1102_s28, %s669_s7  ;;  %p672_p0 = scmp.lt.s32.totalorder %s670_s14, %s664_s13 }
  0x57   : > { %279 = vst [vmem:[%s926_s17 + $0x60] sm:$0xff] %v215_v8  ;;  %280 = vst [vmem:[%s926_s17 + $0x68] sm:$0xff] %v216_v9  ;;  %v223_v16 = vld [vmem:[%s908_s24 + $0x80] sm:$0xff]  ;;  %v224_v17 = vld [vmem:[%s908_s24 + $0x88] sm:$0xff]  ;;  %p666_p9 = pnand %p665_p13, %p1165_p1 }
  0x58   : > { %281 = vst [vmem:[%s926_s17 + $0x70] sm:$0xff] %v217_v10  ;;  %282 = vst [vmem:[%s926_s17 + $0x78] sm:$0xff] %v218_v11  ;;  %v225_v18 = vld [vmem:[%s908_s24 + $0x90] sm:$0xff]  ;;  %v226_v19 = vld [vmem:[%s908_s24 + $0x98] sm:$0xff]  ;;  %p673_p2 = por %p672_p0, %p671_p10 }
  0x59   : > { %283 = vst [vmem:[%s926_s17 + $0x90] sm:$0xff] %v219_v12  ;;  %284 = vst [vmem:[%s926_s17 + $0x98] sm:$0xff] %v220_v13  ;;  %v227_v20 = vld [vmem:[%s908_s24 + $0xa0] sm:$0xff]  ;;  %v228_v21 = vld [vmem:[%s908_s24 + $0xa8] sm:$0xff]  ;;  %p667_p7 = pneg %p666_p9 }
  0x5a   : > { %285 = vst [vmem:[%s926_s17 + $0xa0] sm:$0xff] %v221_v14  ;;  %286 = vst [vmem:[%s926_s17 + $0xa8] sm:$0xff] %v222_v15  ;;  %v229_v22 = vld [vmem:[%s908_s24 + $0xb0] sm:$0xff]  ;;  %v230_v23 = vld [vmem:[%s908_s24 + $0xb8] sm:$0xff] }
  0x5b   : > { %287 = vst [vmem:[%s926_s17 + $0xc0] sm:$0xff] %v223_v16  ;;  %288 = vst [vmem:[%s926_s17 + $0xc8] sm:$0xff] %v224_v17  ;;  %v231_v24 = vld [vmem:[%s908_s24 + $0xc0] sm:$0xff]  ;;  %v232_v25 = vld [vmem:[%s908_s24 + $0xc8] sm:$0xff]  ;;  %p674_p4 = pnand %p673_p2, %p667_p7 }
  0x5c   : > { %289 = vst [vmem:[%s926_s17 + $0xd0] sm:$0xff] %v225_v18  ;;  %290 = vst [vmem:[%s926_s17 + $0xd8] sm:$0xff] %v226_v19  ;;  %v233_v26 = vld [vmem:[%s908_s24 + $0xd0] sm:$0xff]  ;;  %v234_v27 = vld [vmem:[%s908_s24 + $0xd8] sm:$0xff] }
  0x5d   : > { %291 = vst [vmem:[%s926_s17 + $0xf0] sm:$0xff] %v227_v20  ;;  %292 = vst [vmem:[%s926_s17 + $0xf8] sm:$0xff] %v228_v21  ;;  %v235_v28 = vld [vmem:[%s908_s24 + $0xe0] sm:$0xff]  ;;  %v236_v29 = vld [vmem:[%s908_s24 + $0xe8] sm:$0xff] }
  0x5e   : > { %293 = vst [vmem:[%s926_s17 + $0x100] sm:$0xff] %v229_v22  ;;  %294 = vst [vmem:[%s926_s17 + $0x108] sm:$0xff] %v230_v23  ;;  %v237_v30 = vld [vmem:[%s908_s24 + $0xf0] sm:$0xff]  ;;  %v238_v31 = vld [vmem:[%s908_s24 + $0xf8] sm:$0xff] }
  0x5f   : > { %295 = vst [vmem:[%s926_s17 + $0x120] sm:$0xff] %v231_v24  ;;  %296 = vst [vmem:[%s926_s17 + $0x128] sm:$0xff] %v232_v25  ;;  %v239_v32 = vld [vmem:[%s908_s24 + $0x100] sm:$0xff]  ;;  %v240_v33 = vld [vmem:[%s908_s24 + $0x108] sm:$0xff] }
  0x60   : > { %297 = vst [vmem:[%s926_s17 + $0x130] sm:$0xff] %v233_v26  ;;  %298 = vst [vmem:[%s926_s17 + $0x138] sm:$0xff] %v234_v27  ;;  %v241_v34 = vld [vmem:[%s908_s24 + $0x110] sm:$0xff]  ;;  %v242_v35 = vld [vmem:[%s908_s24 + $0x118] sm:$0xff] }
  0x61   : > { %299 = vst [vmem:[%s926_s17 + $0x150] sm:$0xff] %v235_v28  ;;  %300 = vst [vmem:[%s926_s17 + $0x158] sm:$0xff] %v236_v29  ;;  %v243_v36 = vld [vmem:[%s908_s24 + $0x120] sm:$0xff]  ;;  %v244_v37 = vld [vmem:[%s908_s24 + $0x128] sm:$0xff] }
  0x62   : > { %301 = vst [vmem:[%s926_s17 + $0x160] sm:$0xff] %v237_v30  ;;  %302 = vst [vmem:[%s926_s17 + $0x168] sm:$0xff] %v238_v31  ;;  %v245_v38 = vld [vmem:[%s908_s24 + $0x130] sm:$0xff]  ;;  %v246_v39 = vld [vmem:[%s908_s24 + $0x138] sm:$0xff] }
  0x63   : > { %303 = vst [vmem:[%s926_s17 + $0x180] sm:$0xff] %v239_v32  ;;  %304 = vst [vmem:[%s926_s17 + $0x188] sm:$0xff] %v240_v33  ;;  %v247_v40 = vld [vmem:[%s908_s24 + $0x140] sm:$0xff]  ;;  %v248_v41 = vld [vmem:[%s908_s24 + $0x148] sm:$0xff] }
  0x64   : > { %305 = vst [vmem:[%s926_s17 + $0x190] sm:$0xff] %v241_v34  ;;  %306 = vst [vmem:[%s926_s17 + $0x198] sm:$0xff] %v242_v35  ;;  %v249_v42 = vld [vmem:[%s908_s24 + $0x150] sm:$0xff]  ;;  %v250_v43 = vld [vmem:[%s908_s24 + $0x158] sm:$0xff] }
  0x65   : > { %307 = vst [vmem:[%s926_s17 + $0x1b0] sm:$0xff] %v243_v36  ;;  %308 = vst [vmem:[%s926_s17 + $0x1b8] sm:$0xff] %v244_v37  ;;  %v251_v44 = vld [vmem:[%s908_s24 + $0x160] sm:$0xff]  ;;  %v252_v45 = vld [vmem:[%s908_s24 + $0x168] sm:$0xff] }
  0x66   : > { %309 = vst [vmem:[%s926_s17 + $0x1c0] sm:$0xff] %v245_v38  ;;  %310 = vst [vmem:[%s926_s17 + $0x1c8] sm:$0xff] %v246_v39  ;;  %v253_v46 = vld [vmem:[%s908_s24 + $0x170] sm:$0xff]  ;;  %v254_v47 = vld [vmem:[%s908_s24 + $0x178] sm:$0xff] }
  0x67   : > { %311 = vst [vmem:[%s926_s17 + $0x1e0] sm:$0xff] %v247_v40  ;;  %312 = vst [vmem:[%s926_s17 + $0x1e8] sm:$0xff] %v248_v41  ;;  %v255_v48 = vld [vmem:[%s908_s24 + $0x180] sm:$0xff]  ;;  %v256_v49 = vld [vmem:[%s908_s24 + $0x188] sm:$0xff] }
  0x68   : > { %313 = vst [vmem:[%s926_s17 + $0x1f0] sm:$0xff] %v249_v42  ;;  %314 = vst [vmem:[%s926_s17 + $0x1f8] sm:$0xff] %v250_v43  ;;  %v257_v50 = vld [vmem:[%s908_s24 + $0x190] sm:$0xff]  ;;  %v258_v51 = vld [vmem:[%s908_s24 + $0x198] sm:$0xff] }
  0x69   : > { %315 = vst [vmem:[%s926_s17 + $0x210] sm:$0xff] %v251_v44  ;;  %316 = vst [vmem:[%s926_s17 + $0x218] sm:$0xff] %v252_v45  ;;  %v259_v52 = vld [vmem:[%s908_s24 + $0x1a0] sm:$0xff]  ;;  %v260_v53 = vld [vmem:[%s908_s24 + $0x1a8] sm:$0xff] }
  0x6a   : > { %317 = vst [vmem:[%s926_s17 + $0x220] sm:$0xff] %v253_v46  ;;  %318 = vst [vmem:[%s926_s17 + $0x228] sm:$0xff] %v254_v47  ;;  %v261_v54 = vld [vmem:[%s908_s24 + $0x1b0] sm:$0xff]  ;;  %v262_v55 = vld [vmem:[%s908_s24 + $0x1b8] sm:$0xff] }
  0x6b   : > { %319 = vst [vmem:[%s926_s17 + $0x240] sm:$0xff] %v255_v48  ;;  %320 = vst [vmem:[%s926_s17 + $0x248] sm:$0xff] %v256_v49  ;;  %v263_v56 = vld [vmem:[%s908_s24 + $0x1c0] sm:$0xff]  ;;  %v264_v57 = vld [vmem:[%s908_s24 + $0x1c8] sm:$0xff] }
  0x6c   : > { %321 = vst [vmem:[%s926_s17 + $0x250] sm:$0xff] %v257_v50  ;;  %322 = vst [vmem:[%s926_s17 + $0x258] sm:$0xff] %v258_v51  ;;  %v265_v58 = vld [vmem:[%s908_s24 + $0x1d0] sm:$0xff]  ;;  %v266_v59 = vld [vmem:[%s908_s24 + $0x1d8] sm:$0xff] }
  0x6d   : > { %323 = vst [vmem:[%s926_s17 + $0x270] sm:$0xff] %v259_v52  ;;  %324 = vst [vmem:[%s926_s17 + $0x278] sm:$0xff] %v260_v53  ;;  %v267_v60 = vld [vmem:[%s908_s24 + $0x1e0] sm:$0xff]  ;;  %v268_v61 = vld [vmem:[%s908_s24 + $0x1e8] sm:$0xff] }
  0x6e   : > { %325 = vst [vmem:[%s926_s17 + $0x280] sm:$0xff] %v261_v54  ;;  %326 = vst [vmem:[%s926_s17 + $0x288] sm:$0xff] %v262_v55  ;;  %v269_v62 = vld [vmem:[%s908_s24 + $0x1f0] sm:$0xff]  ;;  %v270_v63 = vld [vmem:[%s908_s24 + $0x1f8] sm:$0xff] }
  0x6f   : > { %327 = vst [vmem:[%s926_s17 + $0x2a0] sm:$0xff] %v263_v56  ;;  %328 = vst [vmem:[%s926_s17 + $0x2a8] sm:$0xff] %v264_v57  ;;  %v335_v0 = vld [vmem:[%s916_s5] sm:$0xff]  ;;  %v336_v1 = vld [vmem:[%s916_s5 + $0x8] sm:$0xff] }
  0x70   : > { %329 = vst [vmem:[%s926_s17 + $0x2b0] sm:$0xff] %v265_v58  ;;  %330 = vst [vmem:[%s926_s17 + $0x2b8] sm:$0xff] %v266_v59  ;;  %v351_v2 = vunpack.c.l.bf16 %v335_v0  ;;  %v352_v3 = vunpack.c.h.bf16 %v335_v0  ;;  %v353_v4 = vunpack.c.l.bf16 %v336_v1  ;;  %v354_v5 = vunpack.c.h.bf16 %v336_v1  ;;  %v337_v6 = vld [vmem:[%s916_s5 + $0x10] sm:$0xff]  ;;  %v338_v7 = vld [vmem:[%s916_s5 + $0x18] sm:$0xff] }
  0x71   : > { %331 = vst [vmem:[%s926_s17 + $0x2d0] sm:$0xff] %v267_v60  ;;  %332 = vst [vmem:[%s926_s17 + $0x2d8] sm:$0xff] %v268_v61  ;;  %v339_v8 = vld [vmem:[%s916_s5 + $0x20] sm:$0xff]  ;;  %v355_v9 = vunpack.c.l.bf16 %v337_v6  ;;  %v356_v10 = vunpack.c.h.bf16 %v337_v6  ;;  %v357_v11 = vunpack.c.l.bf16 %v338_v7  ;;  %v358_v12 = vunpack.c.h.bf16 %v338_v7  ;;  %v340_v13 = vld [vmem:[%s916_s5 + $0x28] sm:$0xff] }
  0x72   : > { %333 = vst [vmem:[%s926_s17 + $0x2e0] sm:$0xff] %v269_v62  ;;  %334 = vst [vmem:[%s926_s17 + $0x2e8] sm:$0xff] %v270_v63  ;;  %v341_v14 = vld [vmem:[%s916_s5 + $0x30] sm:$0xff]  ;;  %v342_v15 = vld [vmem:[%s916_s5 + $0x38] sm:$0xff]  ;;  %v359_v16 = vunpack.c.l.bf16 %v339_v8  ;;  %v360_v17 = vunpack.c.h.bf16 %v339_v8  ;;  %v361_v18 = vunpack.c.l.bf16 %v340_v13  ;;  %v362_v19 = vunpack.c.h.bf16 %v340_v13 }
  0x73   : > { %383 = vst [vmem:[%s926_s17 + $0x20] sm:$0xff] %v351_v2  ;;  %384 = vst [vmem:[%s926_s17 + $0x28] sm:$0xff] %v352_v3  ;;  %v343_v20 = vld [vmem:[%s916_s5 + $0x40] sm:$0xff]  ;;  %v344_v21 = vld [vmem:[%s916_s5 + $0x48] sm:$0xff]  ;;  %v363_v23 = vunpack.c.l.bf16 %v341_v14  ;;  %v364_v24 = vunpack.c.h.bf16 %v341_v14  ;;  %v365_v25 = vunpack.c.l.bf16 %v342_v15  ;;  %v366_v26 = vunpack.c.h.bf16 %v342_v15 }
  0x74   : > { %385 = vst [vmem:[%s926_s17 + $0x50] sm:$0xff] %v353_v4  ;;  %386 = vst [vmem:[%s926_s17 + $0x58] sm:$0xff] %v354_v5  ;;  %v345_v22 = vld [vmem:[%s916_s5 + $0x50] sm:$0xff]  ;;  %v346_v27 = vld [vmem:[%s916_s5 + $0x58] sm:$0xff]  ;;  %v367_v30 = vunpack.c.l.bf16 %v343_v20  ;;  %v368_v31 = vunpack.c.h.bf16 %v343_v20  ;;  %v369_v32 = vunpack.c.l.bf16 %v344_v21  ;;  %v370_v33 = vunpack.c.h.bf16 %v344_v21 }
  0x75   : > { %387 = vst [vmem:[%s926_s17 + $0x80] sm:$0xff] %v355_v9  ;;  %388 = vst [vmem:[%s926_s17 + $0x88] sm:$0xff] %v356_v10  ;;  %v347_v28 = vld [vmem:[%s916_s5 + $0x60] sm:$0xff]  ;;  %v348_v29 = vld [vmem:[%s916_s5 + $0x68] sm:$0xff]  ;;  %v371_v36 = vunpack.c.l.bf16 %v345_v22  ;;  %v372_v37 = vunpack.c.h.bf16 %v345_v22  ;;  %v373_v38 = vunpack.c.l.bf16 %v346_v27  ;;  %v374_v39 = vunpack.c.h.bf16 %v346_v27 }
  0x76   : > { %389 = vst [vmem:[%s926_s17 + $0xb0] sm:$0xff] %v357_v11  ;;  %390 = vst [vmem:[%s926_s17 + $0xb8] sm:$0xff] %v358_v12  ;;  %v349_v34 = vld [vmem:[%s916_s5 + $0x70] sm:$0xff]  ;;  %v350_v35 = vld [vmem:[%s916_s5 + $0x78] sm:$0xff]  ;;  %v375_v40 = vunpack.c.l.bf16 %v347_v28  ;;  %v376_v41 = vunpack.c.h.bf16 %v347_v28  ;;  %v377_v42 = vunpack.c.l.bf16 %v348_v29  ;;  %v378_v43 = vunpack.c.h.bf16 %v348_v29 }
  0x77   : > { %391 = vst [vmem:[%s926_s17 + $0xe0] sm:$0xff] %v359_v16  ;;  %392 = vst [vmem:[%s926_s17 + $0xe8] sm:$0xff] %v360_v17  ;;  %v379_v44 = vunpack.c.l.bf16 %v349_v34  ;;  %v380_v45 = vunpack.c.h.bf16 %v349_v34  ;;  %v381_v46 = vunpack.c.l.bf16 %v350_v35  ;;  %v382_v47 = vunpack.c.h.bf16 %v350_v35 }
  0x78   : > { %393 = vst [vmem:[%s926_s17 + $0x110] sm:$0xff] %v361_v18  ;;  %394 = vst [vmem:[%s926_s17 + $0x118] sm:$0xff] %v362_v19 }
  0x79   : > { %395 = vst [vmem:[%s926_s17 + $0x140] sm:$0xff] %v363_v23  ;;  %396 = vst [vmem:[%s926_s17 + $0x148] sm:$0xff] %v364_v24 }
  0x7a   : > { %397 = vst [vmem:[%s926_s17 + $0x170] sm:$0xff] %v365_v25  ;;  %398 = vst [vmem:[%s926_s17 + $0x178] sm:$0xff] %v366_v26 }
  0x7b   : > { %399 = vst [vmem:[%s926_s17 + $0x1a0] sm:$0xff] %v367_v30  ;;  %400 = vst [vmem:[%s926_s17 + $0x1a8] sm:$0xff] %v368_v31 }
  0x7c   : > { %401 = vst [vmem:[%s926_s17 + $0x1d0] sm:$0xff] %v369_v32  ;;  %402 = vst [vmem:[%s926_s17 + $0x1d8] sm:$0xff] %v370_v33 }
  0x7d   : > { %403 = vst [vmem:[%s926_s17 + $0x200] sm:$0xff] %v371_v36  ;;  %404 = vst [vmem:[%s926_s17 + $0x208] sm:$0xff] %v372_v37 }
  0x7e   : > { %405 = vst [vmem:[%s926_s17 + $0x230] sm:$0xff] %v373_v38  ;;  %406 = vst [vmem:[%s926_s17 + $0x238] sm:$0xff] %v374_v39 }
  0x7f   : > { %407 = vst [vmem:[%s926_s17 + $0x260] sm:$0xff] %v375_v40  ;;  %408 = vst [vmem:[%s926_s17 + $0x268] sm:$0xff] %v376_v41 }
  0x80   : > { %409 = vst [vmem:[%s926_s17 + $0x290] sm:$0xff] %v377_v42  ;;  %410 = vst [vmem:[%s926_s17 + $0x298] sm:$0xff] %v378_v43 }
  0x81   : > { %411 = vst [vmem:[%s926_s17 + $0x2c0] sm:$0xff] %v379_v44  ;;  %412 = vst [vmem:[%s926_s17 + $0x2c8] sm:$0xff] %v380_v45 }
  0x82   : > { %413 = vst [vmem:[%s926_s17 + $0x2f0] sm:$0xff] %v381_v46  ;;  %414 = vst [vmem:[%s926_s17 + $0x2f8] sm:$0xff] %v382_v47 }
  0x83   : > { %677 = shalt.err (!%p674_p4)
}
  0x84   : > { %s678_s16 = scalar_lea.hbm %s1100_s27, 12288  ;;  %s682_s24 = scalar_lea.hbm %s1155_s2, 24576 }
  0x85   : > { %p679_p3 = scmp.ne.s32.totalorder %s1100_s27, %s678_s16  ;;  %p683_p12 = scmp.lt.s32.totalorder %s1100_s27, %s1155_s2 }
  0x86   : > { %p684_p8 = scmp.lt.s32.totalorder %s682_s24, %s678_s16 }
  0x87   : > { %p680_p5 = pnand %p679_p3, %p1165_p1 }
  0x88   : > { %p685_p6 = por %p684_p8, %p683_p12 }
  0x89   : > { %p681_p11 = pneg %p680_p5 }
  0x8b   : > { %p686_p13 = pnand %p685_p6, %p681_p11 }
  0x8d   : > { %689 = shalt.err (!%p686_p13)
}
  0x8e   : > { %s741_s5 = smov 768   ;;  %s742_s8 = smov 48  }
  0x8f   : > { %555 = dma.vmem_to_hbm [thread:$0]  (%p1165_p1), %s1102_s28, 12288, %s1100_s27, %s416_s29, %s741_s5, %s741_s5, %s742_s8  }
  0x90 PF: > { %s445_s17 = sand.u32 1, %s720_s9   ;;  %p1166_p9 = scmp.ne.s32.totalorder %s1161_s22, 0 }
  0x91   : > { %p1167_p7 = scmp.ge.s32.totalorder %s732_s12, 2  ;;  %s446_s20 = scalar_lea.sflag [#allocation4], %s445_s17 }
  0x93   : > { %p565_p10 = pnand %p1167_p7, %p1166_p9 }
  0x95   : > { %p566_p0 = pneg %p565_p10 }
  0x97   : > { %715 = dma.done.wait (%p566_p0), %s446_s20, 12288  }
  0x98   : > { %717 = vsyncadd (%p566_p0), %s446_s20, 4294955008  ;;  %p18_p2 = scmp.ge.s32.totalorder %s783_s15, 4   ;;  %s1168_s9 = smov %s724_s10 }
  0x99   : > { %s1169_s10 = smov %s728_s11  ;;  %s1170_s11 = smov %s795_s18 }
  0x9a   : > { %s1171_s12 = smov %s783_s15  ;;  %20 = sbr.rel (!%p18_p2) target bundleno = 7 (0x7), region = 86 }
  0x9f   :  { %451 = vsyncpa [#allocation3], 1 }
  0xa0   :  { %453 = vsyncpa [#allocation3 + $0x1], 1 }
  0xa1   :  { %454 = vsyncpa [#allocation6], 1 }
  0xa2   :  { %456 = vsyncpa [#allocation6 + $0x1], 1 }
  0xa3   :  { %457 = vsyncpa [#allocation4], 1 }
  0xa4   :  { %459 = vsyncpa [#allocation4 + $0x1], 1 }

</bundles_post_ra>
